<compile_context>
chip_gen: v5e
topology: v5e:2x2
jax: 0.10.0
libtpu: 0.0.40
codegen_flags: <defaults>
</compile_context>

<pallas_src>
import functools

import jax
import jax.numpy as jnp
from jax.experimental import pallas as pl
from jax.experimental.pallas import tpu as pltpu


def _focal_loss_kernel(logits_ref, labels_ref, loss_ref, cnt_ref, *,
                       gamma, ignore_lb, hw):
    k = pl.program_id(1)                         # pixel-chunk index (parallel)
    t = pl.program_id(2)                         # tile index within the chunk
    tiles_per_chunk = pl.num_programs(2)

    # zero this (n, k) accumulator block at the start of its tile loop
    @pl.when(t == 0)
    def _():
        loss_ref[...] = jnp.zeros_like(loss_ref)
        cnt_ref[...] = jnp.zeros_like(cnt_ref)

    x = logits_ref[0].astype(jnp.float32)        # (C, T): classes on sublanes,
    C, T = x.shape                               #          pixels lane-dense
    lab = labels_ref[0].astype(jnp.int32)        # (1, T)

    # softmax denominator over the class (sublane) axis — the only (C,T)-sized
    # transcendental work (N*C*HW exps total, unavoidable).
    m = jnp.max(x, axis=0, keepdims=True)        # (1, T)   XLU reduce
    z = x - m                                    # (C, T)   z <= 0
    e = jnp.exp(z)                               # (C, T)   EUP
    s = jnp.sum(e, axis=0, keepdims=True)        # (1, T)   XLU reduce
    log_s = jnp.log(s)                           # (1, T)   EUP, >= 0

    # gather-first: only the label class's shifted logit is needed from here on
    cls = jax.lax.broadcasted_iota(jnp.int32, (C, T), 0)
    onehot = cls == lab                          # (C, T)
    z_lab = jnp.sum(jnp.where(onehot, z, 0.0),   # (1, T)
                    axis=0, keepdims=True)

    log_p = z_lab - log_s                        # log_softmax at label class, <= 0
    p = jnp.exp(log_p)                           # (1, T) EUP, p <= 1
    one_minus = jnp.maximum(1.0 - p, 0.0)        # clamp against rounding

    # focal factor (1 - p)**gamma, strength-reduced for integer gamma
    g = float(gamma)
    if g == float(int(g)) and 0 <= int(g) <= 8:
        factor = jnp.ones_like(one_minus)
        for _ in range(int(g)):
            factor = factor * one_minus
    else:
        # non-integer gamma: one (1,T)-sized exp/log pair (was (C,T) before)
        factor = jnp.exp(g * jnp.log(jnp.maximum(one_minus, 0.0)))

    picked = factor * log_p                      # (1, T)

    # validity: not the ignore label AND inside the real H*W range
    g_tile = k * tiles_per_chunk + t
    pix = jax.lax.broadcasted_iota(jnp.int32, (1, T), 1) + g_tile * T
    valid = (lab != ignore_lb) & (pix < hw)      # (1, T)

    # lane-dense accumulation into the VMEM-resident output blocks
    # (kept to exactly two (1,T) stores — friendly to v5e's single vst slot)
    loss_ref[0] += jnp.where(valid, -picked, 0.0)
    cnt_ref[0] += valid.astype(jnp.float32)


def softmax_focal_loss(logits, labels, *, gamma=2.0, ignore_lb=255,
                       tile_pixels=None, pixel_chunks=None):
    """logits: (N, C, H, W); labels: (N, H, W) int. Returns scalar mean loss."""
    N, C, H, W = logits.shape
    HW = H * W

    # free, contiguous views of NCHW — no transpose, no padding copies
    x = logits.reshape(N, C, HW)
    lab = labels.reshape(N, 1, HW)
    if not jnp.issubdtype(lab.dtype, jnp.integer):
        lab = lab.astype(jnp.int32)
    log_itemsize = jnp.dtype(x.dtype).itemsize
    lab_itemsize = jnp.dtype(lab.dtype).itemsize

    # --- tile size: target ~4 MiB per logits block (~8 MiB double-buffered),
    # big enough to amortize the ~0.35 us per-grid-step overhead, small enough
    # for v5e's 16 MiB scoped-VMEM default and v7x's 64 MiB physical VMEM.
    if tile_pixels is None:
        target_bytes = 4 * 1024 * 1024
        tile_pixels = (target_bytes // (C * log_itemsize)) // 128 * 128
        tile_pixels = int(max(512, min(32768, tile_pixels)))

    if HW <= tile_pixels:
        T = HW                       # full pixel dim: always a legal block dim
        num_tiles = 1
    else:
        T = tile_pixels
        assert T % 128 == 0, "tile_pixels must be a multiple of 128"
        num_tiles = pl.cdiv(HW, T)   # ragged tail masked in-kernel

    # --- v7x has 2 TensorCores sharded over "parallel" grid axes; if the batch
    # can't fill them, split the pixel-tile axis into K parallel chunks (only
    # when K divides num_tiles, so no fully out-of-bounds blocks are ever read).
    if pixel_chunks is None:
        pixel_chunks = 1
        if N < 2:
            for cand in (2,):
                if num_tiles >= cand and num_tiles % cand == 0:
                    pixel_chunks = cand
                    break
    K = int(pixel_chunks)
    assert num_tiles % K == 0, "pixel_chunks must divide the number of tiles"
    tiles_per_chunk = num_tiles // K

    # --- explicit VMEM budget: double-buffered inputs + double-buffered
    # (1,T) accumulator outputs, with slack.  Capped below v7x's 64 MiB.
    block_bytes = C * T * log_itemsize + T * lab_itemsize
    acc_bytes = 2 * T * 4
    vmem_needed = 2 * block_bytes + 2 * acc_bytes
    vmem_limit = int(min(56 * 1024 * 1024, max(16 * 1024 * 1024, 3 * vmem_needed)))

    kernel = functools.partial(_focal_loss_kernel, gamma=float(gamma),
                               ignore_lb=int(ignore_lb), hw=HW)

    loss_part, cnt_part = pl.pallas_call(
        kernel,
        out_shape=(jax.ShapeDtypeStruct((N * K, 1, T), jnp.float32),
                   jax.ShapeDtypeStruct((N * K, 1, T), jnp.float32)),
        grid_spec=pltpu.PrefetchScalarGridSpec(
            num_scalar_prefetch=0,
            grid=(N, K, tiles_per_chunk),
            in_specs=[
                pl.BlockSpec((1, C, T),
                             lambda n, k, t: (n, 0, k * tiles_per_chunk + t)),
                pl.BlockSpec((1, 1, T),
                             lambda n, k, t: (n, 0, k * tiles_per_chunk + t)),
            ],
            out_specs=[
                pl.BlockSpec((1, 1, T), lambda n, k, t: (n * K + k, 0, 0)),
                pl.BlockSpec((1, 1, T), lambda n, k, t: (n * K + k, 0, 0)),
            ],
        ),
        compiler_params=pltpu.CompilerParams(
            dimension_semantics=("parallel", "parallel", "arbitrary"),
            vmem_limit_bytes=vmem_limit),
    )(x, lab)

    # tiny final reductions + NLLLoss(reduction='mean', ignore_index=ignore_lb)
    num = jnp.sum(loss_part)
    den = jnp.sum(cnt_part)
    return num / den


def _reference(logits, labels, gamma, ignore_lb):
    # pure-JAX reference of the PyTorch forward, for a sanity check
    scores = jax.nn.softmax(logits, axis=1)
    factor = (1.0 - scores) ** gamma
    log_score = jax.nn.log_softmax(logits, axis=1)
    w = factor * log_score                            # (N, C, H, W)
    lab = labels.astype(jnp.int32)
    valid = lab != ignore_lb
    lab_safe = jnp.where(valid, lab, 0)
    picked = jnp.take_along_axis(w, lab_safe[:, None, :, :], axis=1)[:, 0]
    num = jnp.sum(jnp.where(valid, -picked, 0.0))
    den = jnp.sum(valid.astype(jnp.float32))
    return num / den


if __name__ == "__main__":
    key = jax.random.PRNGKey(0)
    gamma = 2.0
    ignore_lb = 255
    k1, k2, k3, k4, k5, k6 = jax.random.split(key, 6)

    # Case 1: single-tile path (HW = 256 fits in one block).
    N, C, H, W = 2, 4, 16, 16
    logits = jax.random.normal(k1, (N, C, H, W), dtype=jnp.float32)
    labels = jax.random.randint(k2, (N, H, W), 0, C, dtype=jnp.int32)
    labels = labels.at[0, :2, :].set(ignore_lb)       # some ignored pixels
    loss = softmax_focal_loss(logits, labels, gamma=gamma, ignore_lb=ignore_lb)
    loss = jax.block_until_ready(loss)
    ref = _reference(logits, labels, gamma, ignore_lb)
    assert jnp.allclose(loss, ref, rtol=1e-5, atol=1e-6), (loss, ref)

    # Case 2: multi-tile path with a ragged tail — HW = 576 is neither a
    # multiple of 128 nor of tile_pixels=256 (3 tiles, last partial), locking
    # in the in-kernel pixel masking of the OOB-padded edge block.
    N2, C2, H2, W2 = 2, 4, 24, 24
    logits2 = jax.random.normal(k3, (N2, C2, H2, W2), dtype=jnp.float32)
    labels2 = jax.random.randint(k4, (N2, H2, W2), 0, C2, dtype=jnp.int32)
    labels2 = labels2.at[1, -3:, :].set(ignore_lb)
    loss2 = softmax_focal_loss(logits2, labels2, gamma=gamma,
                               ignore_lb=ignore_lb, tile_pixels=256)
    loss2 = jax.block_until_ready(loss2)
    ref2 = _reference(logits2, labels2, gamma, ignore_lb)
    assert jnp.allclose(loss2, ref2, rtol=1e-5, atol=1e-6), (loss2, ref2)

    # Case 3: N=1 — exercises the parallel pixel-chunk split (K=2) used to
    # keep both v7x TensorCores busy, together with a ragged last tile
    # (HW = 900, tile = 256 -> 4 tiles in 2 chunks, last tile partial).
    N3, C3, H3, W3 = 1, 4, 30, 30
    logits3 = jax.random.normal(k5, (N3, C3, H3, W3), dtype=jnp.float32)
    labels3 = jax.random.randint(k6, (N3, H3, W3), 0, C3, dtype=jnp.int32)
    labels3 = labels3.at[0, :1, :].set(ignore_lb)
    loss3 = softmax_focal_loss(logits3, labels3, gamma=gamma,
                               ignore_lb=ignore_lb, tile_pixels=256)
    loss3 = jax.block_until_ready(loss3)
    ref3 = _reference(logits3, labels3, gamma, ignore_lb)
    assert jnp.allclose(loss3, ref3, rtol=1e-5, atol=1e-6), (loss3, ref3)

    print("KERNEL_OK")
</pallas_src>

<mosaic_0001>
module attributes {stable_mosaic.version = 11 : i64} {
  func.func @_focal_loss_kernel(%arg0: i32, %arg1: i32, %arg2: i32, %arg3: memref<1x4x256xf32, #tpu.memory_space<vmem>>, %arg4: memref<1x1x256xi32, #tpu.memory_space<vmem>>, %arg5: memref<1x1x256xf32, #tpu.memory_space<vmem>>, %arg6: memref<1x1x256xf32, #tpu.memory_space<vmem>>) attributes {dimension_semantics = [#tpu.dimension_semantics<parallel>, #tpu.dimension_semantics<parallel>, #tpu.dimension_semantics<arbitrary>], iteration_bounds = array<i64: 2, 1, 1>, scalar_prefetch = 0 : i64, scratch_operands = 0 : i64, tpu.core_type = #tpu.core_type<tc>, window_params = [{transform_indices = @transform_0, window_bounds = array<i64: 1, 4, 256>}, {transform_indices = @transform_1, window_bounds = array<i64: 1, 1, 256>}, {transform_indices = @transform_2, window_bounds = array<i64: 1, 1, 256>}, {transform_indices = @transform_3, window_bounds = array<i64: 1, 1, 256>}]} {
    %c0_i32 = arith.constant 0 : i32
    %0 = arith.cmpi eq, %arg2, %c0_i32 : i32
    %1 = arith.extui %0 : i1 to i32
    %c0_i32_0 = arith.constant 0 : i32
    %2 = arith.cmpi ne, %1, %c0_i32_0 : i32
    scf.if %2 {
      %cst_27 = arith.constant 0.000000e+00 : f32
      %61 = vector.broadcast %cst_27 : f32 to vector<1x1x256xf32>
      %c0_28 = arith.constant 0 : index
      %c0_29 = arith.constant 0 : index
      %c0_30 = arith.constant 0 : index
      %62 = vector.load %arg5[%c0_28, %c0_29, %c0_30] : memref<1x1x256xf32, #tpu.memory_space<vmem>>, vector<1x1x256xf32>
      tpu.vector_store %arg5[%c0_28, %c0_29, %c0_30], %61 {strides = array<i32>} : memref<1x1x256xf32, #tpu.memory_space<vmem>>, vector<1x1x256xf32>,
      %cst_31 = arith.constant 0.000000e+00 : f32
      %63 = vector.broadcast %cst_31 : f32 to vector<1x1x256xf32>
      %c0_32 = arith.constant 0 : index
      %c0_33 = arith.constant 0 : index
      %c0_34 = arith.constant 0 : index
      %64 = vector.load %arg6[%c0_32, %c0_33, %c0_34] : memref<1x1x256xf32, #tpu.memory_space<vmem>>, vector<1x1x256xf32>
      tpu.vector_store %arg6[%c0_32, %c0_33, %c0_34], %63 {strides = array<i32>} : memref<1x1x256xf32, #tpu.memory_space<vmem>>, vector<1x1x256xf32>,
    } else {
    }
    %c0 = arith.constant 0 : index
    %c0_1 = arith.constant 0 : index
    %c0_2 = arith.constant 0 : index
    %3 = vector.load %arg3[%c0, %c0_1, %c0_2] : memref<1x4x256xf32, #tpu.memory_space<vmem>>, vector<1x4x256xf32>
    %4 = vector.shape_cast %3 : vector<1x4x256xf32> to vector<4x256xf32>
    %c0_3 = arith.constant 0 : index
    %c0_4 = arith.constant 0 : index
    %c0_5 = arith.constant 0 : index
    %5 = vector.load %arg4[%c0_3, %c0_4, %c0_5] : memref<1x1x256xi32, #tpu.memory_space<vmem>>, vector<1x1x256xi32>
    %6 = vector.shape_cast %5 : vector<1x1x256xi32> to vector<1x256xi32>
    %cst = arith.constant dense<0xFF800000> : vector<256xf32>
    %7 = vector.multi_reduction <maximumf>, %4, %cst [0] : vector<4x256xf32> to vector<256xf32>
    %8 = vector.shape_cast %7 : vector<256xf32> to vector<1x256xf32>
    %9 = vector.broadcast %8 : vector<1x256xf32> to vector<4x256xf32>
    %10 = arith.subf %4, %9 : vector<4x256xf32>
    %11 = math.exp %10 : vector<4x256xf32>
    %cst_6 = arith.constant dense<0.000000e+00> : vector<256xf32>
    %12 = vector.multi_reduction <add>, %11, %cst_6 [0] : vector<4x256xf32> to vector<256xf32>
    %13 = vector.shape_cast %12 : vector<256xf32> to vector<1x256xf32>
    %14 = math.log %13 : vector<1x256xf32>
    %15 = tpu.iota {dimensions = array<i32: 0>} : vector<4x256xi32>
    %16 = vector.broadcast %6 : vector<1x256xi32> to vector<4x256xi32>
    %17 = arith.cmpi eq, %15, %16 : vector<4x256xi32>
    %cst_7 = arith.constant 0.000000e+00 : f32
    %18 = vector.broadcast %cst_7 : f32 to vector<4x256xf32>
    %19 = arith.select %17, %10, %18 : vector<4x256xi1>, vector<4x256xf32>
    %cst_8 = arith.constant dense<0.000000e+00> : vector<256xf32>
    %20 = vector.multi_reduction <add>, %19, %cst_8 [0] : vector<4x256xf32> to vector<256xf32>
    %21 = vector.shape_cast %20 : vector<256xf32> to vector<1x256xf32>
    %22 = arith.subf %21, %14 : vector<1x256xf32>
    %23 = math.exp %22 : vector<1x256xf32>
    %cst_9 = arith.constant 1.000000e+00 : f32
    %24 = vector.broadcast %cst_9 : f32 to vector<1x256xf32>
    %25 = arith.subf %24, %23 : vector<1x256xf32>
    %cst_10 = arith.constant 0.000000e+00 : f32
    %26 = vector.broadcast %cst_10 : f32 to vector<1x256xf32>
    %27 = arith.maximumf %25, %26 : vector<1x256xf32>
    %cst_11 = arith.constant 1.000000e+00 : f32
    %28 = vector.broadcast %cst_11 : f32 to vector<1x256xf32>
    %29 = arith.mulf %28, %27 : vector<1x256xf32>
    %30 = arith.mulf %29, %27 : vector<1x256xf32>
    %31 = arith.mulf %30, %22 : vector<1x256xf32>
    %c1_i32 = arith.constant 1 : i32
    %32 = arith.muli %arg1, %c1_i32 : i32
    %33 = arith.addi %32, %arg2 : i32
    %34 = tpu.iota {dimensions = array<i32: 1>} : vector<1x256xi32>
    %c256_i32 = arith.constant 256 : i32
    %35 = arith.muli %33, %c256_i32 : i32
    %36 = vector.broadcast %35 : i32 to vector<1x256xi32>
    %37 = arith.addi %34, %36 : vector<1x256xi32>
    %c255_i32 = arith.constant 255 : i32
    %38 = vector.broadcast %c255_i32 : i32 to vector<1x256xi32>
    %39 = arith.cmpi ne, %6, %38 : vector<1x256xi32>
    %c256_i32_12 = arith.constant 256 : i32
    %40 = vector.broadcast %c256_i32_12 : i32 to vector<1x256xi32>
    %41 = arith.cmpi slt, %37, %40 : vector<1x256xi32>
    %42 = arith.andi %39, %41 : vector<1x256xi1>
    %c0_13 = arith.constant 0 : index
    %c0_14 = arith.constant 0 : index
    %c0_15 = arith.constant 0 : index
    %43 = vector.load %arg5[%c0_13, %c0_14, %c0_15] : memref<1x1x256xf32, #tpu.memory_space<vmem>>, vector<1x1x256xf32>
    %44 = vector.shape_cast %43 : vector<1x1x256xf32> to vector<1x256xf32>
    %cst_16 = arith.constant 0.000000e+00 : f32
    %45 = vector.broadcast %cst_16 : f32 to vector<1x256xf32>
    %46 = arith.subf %45, %31 : vector<1x256xf32>
    %cst_17 = arith.constant 0.000000e+00 : f32
    %47 = vector.broadcast %cst_17 : f32 to vector<1x256xf32>
    %48 = arith.select %42, %46, %47 : vector<1x256xi1>, vector<1x256xf32>
    %49 = arith.addf %44, %48 : vector<1x256xf32>
    %c0_18 = arith.constant 0 : index
    %c0_19 = arith.constant 0 : index
    %c0_20 = arith.constant 0 : index
    %50 = vector.load %arg5[%c0_18, %c0_19, %c0_20] : memref<1x1x256xf32, #tpu.memory_space<vmem>>, vector<1x1x256xf32>
    %51 = vector.shape_cast %50 : vector<1x1x256xf32> to vector<1x256xf32>
    %52 = vector.shape_cast %49 : vector<1x256xf32> to vector<1x1x256xf32>
    tpu.vector_store %arg5[%c0_18, %c0_19, %c0_20], %52 {strides = array<i32>} : memref<1x1x256xf32, #tpu.memory_space<vmem>>, vector<1x1x256xf32>,
    %c0_21 = arith.constant 0 : index
    %c0_22 = arith.constant 0 : index
    %c0_23 = arith.constant 0 : index
    %53 = vector.load %arg6[%c0_21, %c0_22, %c0_23] : memref<1x1x256xf32, #tpu.memory_space<vmem>>, vector<1x1x256xf32>
    %54 = vector.shape_cast %53 : vector<1x1x256xf32> to vector<1x256xf32>
    %55 = arith.extui %42 : vector<1x256xi1> to vector<1x256xi32>
    %56 = arith.sitofp %55 : vector<1x256xi32> to vector<1x256xf32>
    %57 = arith.addf %54, %56 : vector<1x256xf32>
    %c0_24 = arith.constant 0 : index
    %c0_25 = arith.constant 0 : index
    %c0_26 = arith.constant 0 : index
    %58 = vector.load %arg6[%c0_24, %c0_25, %c0_26] : memref<1x1x256xf32, #tpu.memory_space<vmem>>, vector<1x1x256xf32>
    %59 = vector.shape_cast %58 : vector<1x1x256xf32> to vector<1x256xf32>
    %60 = vector.shape_cast %57 : vector<1x256xf32> to vector<1x1x256xf32>
    tpu.vector_store %arg6[%c0_24, %c0_25, %c0_26], %60 {strides = array<i32>} : memref<1x1x256xf32, #tpu.memory_space<vmem>>, vector<1x1x256xf32>,
    return
  }
  func.func @transform_0(%arg0: i32, %arg1: i32, %arg2: i32) -> (i32, i32, i32) {
    %c1_i32 = arith.constant 1 : i32
    %0 = arith.muli %arg1, %c1_i32 : i32
    %1 = arith.addi %0, %arg2 : i32
    %c0_i32 = arith.constant 0 : i32
    %c0_i32_0 = arith.constant 0 : i32
    return %arg0, %c0_i32, %1 : i32, i32, i32
  }
  func.func @transform_1(%arg0: i32, %arg1: i32, %arg2: i32) -> (i32, i32, i32) {
    %c1_i32 = arith.constant 1 : i32
    %0 = arith.muli %arg1, %c1_i32 : i32
    %1 = arith.addi %0, %arg2 : i32
    %c0_i32 = arith.constant 0 : i32
    %c0_i32_0 = arith.constant 0 : i32
    return %arg0, %c0_i32, %1 : i32, i32, i32
  }
  func.func @transform_2(%arg0: i32, %arg1: i32, %arg2: i32) -> (i32, i32, i32) {
    %c1_i32 = arith.constant 1 : i32
    %0 = arith.muli %arg0, %c1_i32 : i32
    %1 = arith.addi %0, %arg1 : i32
    %c0_i32 = arith.constant 0 : i32
    %c0_i32_0 = arith.constant 0 : i32
    %c0_i32_1 = arith.constant 0 : i32
    return %1, %c0_i32, %c0_i32_0 : i32, i32, i32
  }
  func.func @transform_3(%arg0: i32, %arg1: i32, %arg2: i32) -> (i32, i32, i32) {
    %c1_i32 = arith.constant 1 : i32
    %0 = arith.muli %arg0, %c1_i32 : i32
    %1 = arith.addi %0, %arg1 : i32
    %c0_i32 = arith.constant 0 : i32
    %c0_i32_0 = arith.constant 0 : i32
    %c0_i32_1 = arith.constant 0 : i32
    return %1, %c0_i32, %c0_i32_0 : i32, i32, i32
  }
}

</mosaic_0001>

<bundles_post_ra>
// kernel: tpu_custom_call.1
= control target key start
LH: loop header
LB: loop body
LE: loop exit
PB: predicated region body
PF: predicated region fallthrough
CT: control target
= control target key end

     0   :  { %9 = vsyncpa [#allocation3], 0  ;;  %s1122_s0 = inlined_call_operand.hbm [shape: f32[2,4,256], index: 0, kind: input, shape index: {}]   ;;  %s1123_s1 = inlined_call_operand.hbm [shape: s32[2,1,256], index: 1, kind: input, shape index: {}]   ;;  %s1124_s2 = inlined_call_operand.hbm [shape: f32[2,1,256], index: 2, kind: output, shape index: {0}]   ;;  %s1125_s3 = inlined_call_operand.hbm [shape: f32[2,1,256], index: 3, kind: output, shape index: {1}]  }
   0x1   :  { %11 = vsyncpa [#allocation3 + $0x1], 0 }
   0x2   :  { %12 = vsyncpa [#allocation6], 0 }
   0x3   :  { %14 = vsyncpa [#allocation6 + $0x1], 0 }
   0x4   :  { %15 = vsyncpa [#allocation4], 0 }
   0x5   :  { %17 = vsyncpa [#allocation4 + $0x1], 0 }
   0x6   :  { %18 = vsyncpa [#allocation9], 0 }
   0x7   :  { %20 = vsyncpa [#allocation9 + $0x1], 0  ;;  %s918_s12 = smov 0   ;;  %s920_s13 = smov 0  }
   0x8   :  { %s922_s14 = smov 0   ;;  %s924_s15 = smov 0  }
   0x9   :  { %s926_s16 = smov 0   ;;  %s928_s17 = smov 0  }
   0xa LB: > { %s610_s18 = sadd.s32 4294967295, %s894_s17   ;;  %s611_s19 = sadd.s32 4294967294, %s894_s17   ;;  %s894_s17 = sphi %s928_s17, %s26_s17   ;;  %s890_s16 = sphi %s926_s16, %s1139_s16   ;;  %s886_s15 = sphi %s924_s15, %s1138_s15   ;;  %s882_s14 = sphi %s922_s14, %s1137_s14   ;;  %s878_s13 = sphi %s920_s13, %s1136_s13   ;;  %s874_s12 = sphi %s918_s12, %s1135_s12  }
   0xb   : > { %s45_s20 = sadd.s32 1, %s890_s16  ;;  %s56_s21 = sadd.s32 1, %s882_s14 }
   0xc   : > { %p47_p0 = scmp.ge.s32.totalorder %s45_s20, 2  ;;  %p63_p1 = scmp.ne.s32.totalorder %s882_s14, %s878_s13 }
   0xd   : > { %p64_p2 = scmp.eq.s32.totalorder %s894_s17, 0  ;;  %p69_p3 = scmp.ne.s32.totalorder %s878_s13, %s874_s12 }
   0xe   : > { %s1141_s20 = smov (%p47_p0, %s45_s20), 0  ;;  %p70_p5 = scmp.eq.s32.totalorder %s610_s18, 0 }
   0xf   : > { %p959_p4 = por %p64_p2, %p63_p1  ;;  %s51_s23 = ssub.s32 %s890_s16, %s1141_s20 }
  0x10   : > { %p125_p6 = scmp.eq.s32.totalorder %s610_s18, 1  ;;  %p54_p7 = scmp.eq.s32.totalorder %s51_s23, 0 }
  0x11   : > { %p965_p8 = por %p70_p5, %p69_p3  ;;  %p131_p10 = scmp.eq.s32.totalorder %s611_s19, 1 }
  0x12   : > { %p969_p9 = por %p125_p6, %p63_p1  ;;  %p613_p12 = scmp.ge.s32.totalorder %s894_s17, 2 }
  0x13   : > { %s974_s26 = scalar_select %p54_p7, %s882_s14, %s56_s21  }
  0x14   : > { %p976_p11 = por %p131_p10, %p69_p3  ;;  %p654_p13 = scmp.lt.s32.totalorder %s894_s17, 2 }
  0x15   : > { %s179_s28 = sand.u32 1, %s882_s14   ;;  %s631_s30 = sshll.u32 %s890_s16, 3 }
  0x16   : > { %s614_s29 = sshll.u32 %s179_s28, 3  ;;  %s191_s6 = scalar_lea.hbm %s1122_s0, %s631_s30 }
  0x17   : > { %s183_s7 = scalar_lea.vmem [#allocation2], %s614_s29  ;;  %s193_s9 = sshll.u32 %s191_s6, 4  ;;  %s194_s9 = int_to_ptr.hbm [resolvable:$true] %s193_s9 }
  0x18   : > { %s195_s8 = sshll.u32 %s183_s7, 4  ;;  %p989_p0 = pnand %p654_p13, %p959_p4  ;;  %s196_s8 = int_to_ptr.vmem [resolvable:$true] %s195_s8 }
  0x19   : > { %p619_p1 = scmp.ge.s32.totalorder %s894_s17, 1  ;;  %p222_p2 = scmp.lt.s32.totalorder %s894_s17, 3 }
  0x1a   : > { %s180_s11 = scalar_lea.sflag [#allocation3], %s179_s28  ;;  %s617_s18 = sshll.u32 %s179_s28, 1 }
  0x1b   : > { %643 = dma.hbm_to_vmem [thread:$0]  (!%p989_p0), %s194_s9, 128, %s196_s8, %s180_s11  }
  0x1c   : > { %p223_p3 = pnand %p619_p1, %p222_p2  ;;  %s618_s19 = sshll.u32 %s890_s16, 1 }
  0x1d   : > { %s213_s29 = scalar_lea.hbm %s1123_s1, %s618_s19  ;;  %s206_s30 = scalar_lea.vmem [#allocation5], %s617_s18 }
  0x1e   : > { %s217_s22 = sshll.u32 %s206_s30, 4  ;;  %s215_s4 = sshll.u32 %s213_s29, 4  ;;  %s218_s22 = int_to_ptr.vmem [resolvable:$true] %s217_s22  ;;  %s216_s4 = int_to_ptr.hbm [resolvable:$true] %s215_s4 }
  0x1f   : > { %s203_s5 = scalar_lea.sflag [#allocation6], %s179_s28  ;;  %226 = sbr.rel (%p223_p3) target bundleno = 138 (0x8a), region = 28 }
  0x20   : > { %646 = dma.hbm_to_vmem [thread:$0]  (!%p989_p0), %s216_s4, 32, %s218_s22, %s203_s5  }
  0x21   : > { %s1004_s6 = sand.u32 (!%p223_p3), 1, %s878_s13  }
  0x22   : > { %s620_s7 = sshll.u32 (!%p223_p3), %s1004_s6, 3  ;;  %s229_s8 = scalar_lea.sflag (!%p223_p3), [#allocation3], %s1004_s6 }
  0x23   : > { %s232_s9 = scalar_lea.vmem (!%p223_p3), [#allocation2], %s620_s7 }
  0x24   : > { %857 = dma.done.wait (%p965_p8), %s229_s8, 128  }
  0x25   : > { %859 = vsyncadd (%p965_p8), %s229_s8, 4294967168  ;;  %s1013_s28 = sshll.u32 %s1004_s6, 1  ;;  %s239_s10 = scalar_lea.sflag [#allocation6], %s1004_s6 }
  0x26   : > { %s242_s11 = scalar_lea.vmem [#allocation5], %s1013_s28 }
  0x27   : > { %861 = dma.done.wait (%p965_p8), %s239_s10, 32  }
  0x28   : > { %863 = vsyncadd (%p965_p8), %s239_s10, 4294967264  ;;  %v292_v0 = vld [vmem:[%s232_s9] sm:$0xff]  ;;  %vm300_vm0 = vcmask 1043456   ;;  %v286_v19 = vlaneseq  ;;  %s1029_s24 = scalar_lea.vmem [#allocation7], %s1013_s28  ;;  %v896_v23 = vmov 0.0   ;;  %s1035_s18 = scalar_lea.vmem [#allocation8], %s1013_s28 }
  0x29   : > { %295 = vst [vmem:[#allocation1] ss:$2 sm:$0xff] %v292_v0  ;;  %v293_v25 = vld [vmem:[%s242_s11] sm:$0x3]  ;;  %s627_s19 = sshll.u32 %s886_s15, 1  ;;  %v897_v51 = vmov 1  }
  0x2a   : > { %vm1024_vm1 = vcmp.lt.s32.totalorder %v286_v19, 256  ;;  %v348_v30 = vshrl.u32 %v286_v19, 7  ;;  %v349_v33 = vperm.slane %v293_v25, 0  ;;  %v350_v34 = vperm.slane %v293_v25, 1  ;;  %s459_s29 = scalar_lea.hbm %s1125_s3, %s627_s19  ;;  %s461_s30 = sshll.u32 %s1035_s18, 4  ;;  %s462_s30 = int_to_ptr.vmem [resolvable:$true] %s461_s30 }
  0x2b   : > { %290 = vst.msk [vmem:[%s1029_s24] sm:$0x3] %vm1024_vm1, %v896_v23  ;;  %v402_v52 = vrot.slane %v897_v51, 7  ;;  %vm403_vm4 = vcmask 1040384   ;;  %vm397_vm5 = vcmp.ne.s32.totalorder %v293_v25, 255  ;;  %s463_s22 = sshll.u32 %s459_s29, 4  ;;  %s464_s22 = int_to_ptr.hbm [resolvable:$true] %s463_s22 }
  0x2c   : > { %291 = vst.msk [vmem:[%s1035_s18] sm:$0x3] %vm1024_vm1, %v896_v23  ;;  %vm351_vm2 = vcmp.eq.s32.totalorder %v348_v30, %v349_v33  ;;  %vm352_vm3 = vcmp.eq.s32.totalorder %v348_v30, %v350_v34  ;;  %s433_s4 = scalar_lea.sflag [#allocation9], %s1004_s6  ;;  %s790_s5 = sshra.s32 %s464_s22, 4  ;;  %s791_s5 = int_to_ptr.hbm [resolvable:$true] %s790_s5 }
  0x2d   : > { %v404_v57 = vsel %vm403_vm4, 1, %v402_v52  ;;  %s792_s7 = scalar_lea.hbm %s791_s5, 2  ;;  %s796_s28 = scalar_lea.hbm %s1125_s3, 4 }
  0x2e   : > { %vm405_vm6 = vcmp.ne.s32.totalorder %v404_v57, 0  ;;  %p793_p4 = scmp.ne.s32.totalorder %s791_s5, %s792_s7  ;;  %p797_p7 = scmp.lt.s32.totalorder %s791_s5, %s1125_s3 }
  0x2f   : > { %vm1054_vm7 = vmand %vm397_vm5, %vm405_vm6  ;;  %p798_p8 = scmp.lt.s32.totalorder %s796_s28, %s792_s7 }
  0x30   : > { %v296_v1 = vld.sshfl [vmem:[#allocation1] sm:$0xff pattern:$0x75316420]  ;;  %v297_v2 = vld.sshfl [vmem:[#allocation1 + $0x8] sm:$0xff pattern:$0x75316420]  ;;  %p794_p5 = pnand %p793_p4, %p969_p9 }
  0x31   : > { %v301_v3 = vsel %vm300_vm0, %v296_v1, -inf  ;;  %v308_v4 = vsel %vm300_vm0, %v297_v2, -inf  ;;  %v624_v61 = vsel %vm1054_vm7, 1.0, %v896_v23  ;;  %p799_p10 = por %p798_p8, %p797_p7 }
  0x32   : > { %v302_v5 = vrot.slane %v301_v3, 4  ;;  %v309_v6 = vrot.slane %v308_v4, 4  ;;  %p795_p6 = pneg %p794_p5 }
  0x33   : > { %v422_v62 = vld [vmem:[%s1035_s18] sm:$0x3] }
  0x34   : > { %v303_v7 = vmax.f32 %v301_v3, %v302_v5  ;;  %v310_v8 = vmax.f32 %v308_v4, %v309_v6  ;;  %v425_v1 = vadd.f32 %v624_v61, %v422_v62  ;;  %p800_p13 = pnand %p799_p10, %p795_p6 }
  0x36   : > { %v304_v9 = vrot.slane %v303_v7, 2  ;;  %v311_v10 = vrot.slane %v310_v8, 2  ;;  %426 = vst.msk [vmem:[%s1035_s18] sm:$0x3] %vm1024_vm1, %v425_v1 }
  0x38   : > { %v305_v11 = vmax.f32 %v303_v7, %v304_v9  ;;  %v312_v12 = vmax.f32 %v310_v8, %v311_v10 }
  0x3a   : > { %v306_v13 = vrot.slane %v305_v11, 1  ;;  %v313_v14 = vrot.slane %v312_v12, 1 }
  0x3c   : > { %v314_v15 = vmax.f32 %v312_v12, %v313_v14  ;;  %v307_v16 = vmax.f32 %v305_v11, %v306_v13 }
  0x3e   : > { %v317_v17 = vrot.slane %v314_v15, 4 }
  0x40   : > { %v318_v18 = vsel %vm300_vm0, %v307_v16, %v317_v17 }
  0x41   : > { %v320_v20 = vsub.f32 %v292_v0, %v318_v18 }
  0x43   : > { %v321_v22 = vmul.f32 1.442695, %v320_v20 }
  0x45   : > { %706 = vpow2.f32 %v321_v22 }
  0x4b   : > { %v707_v24 = vpop.eup %706 }
  0x4c   : > { %324 = vst [vmem:[#allocation1] ss:$2 sm:$0xff] %v707_v24 }
  0x53   : > { %v325_v26 = vld.sshfl [vmem:[#allocation1] sm:$0xff pattern:$0x75316420]  ;;  %v326_v27 = vld.sshfl [vmem:[#allocation1 + $0x8] sm:$0xff pattern:$0x75316420] }
  0x54   : > { %v329_v28 = vsel %vm300_vm0, %v325_v26, 0.0  ;;  %v336_v29 = vsel %vm300_vm0, %v326_v27, 0.0  ;;  %354 = vst [vmem:[#allocation1] ss:$2 sm:$0xff] %v320_v20 }
  0x55   : > { %v330_v31 = vrot.slane %v329_v28, 4  ;;  %v337_v32 = vrot.slane %v336_v29, 4 }
  0x57   : > { %v331_v35 = vadd.f32 %v330_v31, %v329_v28  ;;  %v338_v36 = vadd.f32 %v337_v32, %v336_v29 }
  0x59   : > { %v332_v37 = vrot.slane %v331_v35, 2  ;;  %v339_v38 = vrot.slane %v338_v36, 2 }
  0x5b   : > { %v333_v39 = vadd.f32 %v332_v37, %v331_v35  ;;  %v340_v40 = vadd.f32 %v339_v38, %v338_v36  ;;  %v355_v41 = vld.sshfl [vmem:[#allocation1] sm:$0xff pattern:$0x75316420]  ;;  %v356_v42 = vld.sshfl [vmem:[#allocation1 + $0x8] sm:$0xff pattern:$0x75316420] }
  0x5c   : > { %v359_v43 = vsel %vm351_vm2, %v355_v41, 0.0  ;;  %v360_v44 = vsel %vm352_vm3, %v356_v42, 0.0 }
  0x5d   : > { %v334_v45 = vrot.slane %v333_v39, 1  ;;  %v341_v46 = vrot.slane %v340_v40, 1  ;;  %v361_v47 = vsel %vm300_vm0, %v359_v43, 0.0  ;;  %v368_v48 = vsel %vm300_vm0, %v360_v44, 0.0 }
  0x5e   : > { %v362_v49 = vrot.slane %v361_v47, 4  ;;  %v369_v50 = vrot.slane %v368_v48, 4 }
  0x5f   : > { %v335_v53 = vadd.f32 %v334_v45, %v333_v39  ;;  %v342_v54 = vadd.f32 %v341_v46, %v340_v40 }
  0x60   : > { %v363_v55 = vadd.f32 %v362_v49, %v361_v47  ;;  %v370_v56 = vadd.f32 %v369_v50, %v368_v48 }
  0x61   : > { %708 = vlog2.f32 %v335_v53 }
  0x62   : > { %710 = vlog2.f32 %v342_v54  ;;  %v364_v58 = vrot.slane %v363_v55, 2  ;;  %v371_v59 = vrot.slane %v370_v56, 2 }
  0x64   : > { %v365_v63 = vadd.f32 %v364_v58, %v363_v55  ;;  %v372_v0 = vadd.f32 %v371_v59, %v370_v56 }
  0x66   : > { %v366_v2 = vrot.slane %v365_v63, 1  ;;  %v373_v3 = vrot.slane %v372_v0, 1 }
  0x67   : > { %v709_v4 = vpop.eup %708 }
  0x68   : > { %803 = shalt.err (!%p800_p13)
}
  0x69   : > { %637 = dma.vmem_to_hbm [thread:$0]  (%p969_p9), %s462_s30, 32, %s464_s22, %s433_s4   ;;  %v711_v5 = vpop.eup %710  ;;  %v344_v6 = vmul.f32 0.6931472, %v709_v4  ;;  %v367_v7 = vadd.f32 %v366_v2, %v365_v63  ;;  %v374_v8 = vadd.f32 %v373_v3, %v372_v0  ;;  %v407_v28 = vld [vmem:[%s1029_s24] sm:$0x3] }
  0x6a   : > { %v346_v9 = vmul.f32 0.6931472, %v711_v5  ;;  %s444_s23 = scalar_lea.hbm %s1124_s2, %s627_s19  ;;  %s446_s29 = sshll.u32 %s1029_s24, 4  ;;  %s447_s29 = int_to_ptr.vmem [resolvable:$true] %s446_s29 }
  0x6b   : > { %v375_v10 = vsub.f32 %v367_v7, %v344_v6  ;;  %s448_s30 = sshll.u32 %s444_s23, 4  ;;  %s428_s15 = scalar_lea.sflag [#allocation4], %s1004_s6  ;;  %s449_s30 = int_to_ptr.hbm [resolvable:$true] %s448_s30 }
  0x6c   : > { %v376_v11 = vsub.f32 %v374_v8, %v346_v9  ;;  %s818_s22 = sshra.s32 %s449_s30, 4  ;;  %s824_s7 = scalar_lea.hbm %s1124_s2, 4  ;;  %s819_s22 = int_to_ptr.hbm [resolvable:$true] %s818_s22 }
  0x6d   : > { %v377_v12 = vmul.f32 1.442695, %v375_v10  ;;  %s820_s19 = scalar_lea.hbm %s819_s22, 2  ;;  %p825_p3 = scmp.lt.s32.totalorder %s819_s22, %s1124_s2 }
  0x6e   : > { %v379_v13 = vmul.f32 1.442695, %v376_v11  ;;  %p821_p0 = scmp.ne.s32.totalorder %s819_s22, %s820_s19  ;;  %p826_p4 = scmp.lt.s32.totalorder %s824_s7, %s820_s19 }
  0x6f   : > { %712 = vpow2.f32 %v377_v12 }
  0x70   : > { %714 = vpow2.f32 %v379_v13  ;;  %p822_p1 = pnand %p821_p0, %p969_p9  ;;  %p827_p5 = por %p826_p4, %p825_p3 }
  0x72   : > { %p823_p2 = pneg %p822_p1 }
  0x74   : > { %p828_p6 = pnand %p827_p5, %p823_p2 }
  0x75   : > { %v713_v14 = vpop.eup %712 }
  0x76   : > { %v715_v15 = vpop.eup %714  ;;  %v381_v16 = vsub.f32 1.0, %v713_v14 }
  0x77   : > { %v382_v17 = vsub.f32 1.0, %v715_v15 }
  0x78   : > { %v383_v18 = vmax.f32 %v381_v16, 0.0 }
  0x79   : > { %v384_v19 = vmax.f32 %v382_v17, 0.0 }
  0x7a   : > { %v385_v20 = vmul.f32 %v383_v18, %v383_v18 }
  0x7b   : > { %v386_v22 = vmul.f32 %v384_v19, %v384_v19 }
  0x7c   : > { %v387_v23 = vmul.f32 %v385_v20, %v375_v10 }
  0x7d   : > { %v388_v24 = vmul.f32 %v386_v22, %v376_v11 }
  0x7e   : > { %v408_v26 = vsub.f32 0.0, %v387_v23 }
  0x7f   : > { %v409_v25 = vsub.f32 0.0, %v388_v24 }
  0x81   : > { %v412_v27 = vrot.slane %v409_v25, 7 }
  0x83   : > { %v413_v29 = vsel %vm403_vm4, %v408_v26, %v412_v27 }
  0x84   : > { %v415_v30 = vsel %vm1054_vm7, %v413_v29, 0.0 }
  0x85   : > { %v416_v31 = vadd.f32 %v415_v30, %v407_v28 }
  0x87   : > { %421 = vst.msk [vmem:[%s1029_s24] sm:$0x3] %vm1024_vm1, %v416_v31 }
  0x88   : > { %831 = shalt.err (!%p828_p6)
}
  0x89   : > { %636 = dma.vmem_to_hbm [thread:$0]  (%p969_p9), %s447_s29, 32, %s449_s30, %s428_s15  }
  0x8a PF: > { %s475_s6 = sand.u32 1, %s874_s12   ;;  %p648_p7 = pnand %p613_p12, %p976_p11 }
  0x8b   : > { %s476_s24 = scalar_lea.sflag [#allocation4], %s475_s6 }
  0x8c   : > { %p649_p8 = pneg %p648_p7 }
  0x8e   : > { %865 = dma.done.wait (%p649_p8), %s476_s24, 32  }
  0x8f   : > { %867 = vsyncadd (%p649_p8), %s476_s24, 4294967264  ;;  %s486_s28 = scalar_lea.sflag [#allocation9], %s475_s6 }
  0x90   : > { %869 = dma.done.wait (%p649_p8), %s486_s28, 32  }
  0x91   : > { %871 = vsyncadd (%p649_p8), %s486_s28, 4294967264  ;;  %s26_s17 = sadd.s32 1, %s894_s17   ;;  %s1135_s12 = smov %s878_s13 }
  0x92   : > { %p23_p10 = scmp.ge.s32.totalorder %s26_s17, 4   ;;  %s1136_s13 = smov %s882_s14 }
  0x93   : > { %s1137_s14 = smov %s974_s26  ;;  %s1138_s15 = smov %s890_s16 }
  0x94   : > { %s1139_s16 = smov %s1141_s20  ;;  %25 = sbr.rel (!%p23_p10) target bundleno = 10 (0xa), region = 107 }
  0x99   :  { %492 = vsyncpa [#allocation3], 1 }
  0x9a   :  { %494 = vsyncpa [#allocation3 + $0x1], 1 }
  0x9b   :  { %495 = vsyncpa [#allocation6], 1 }
  0x9c   :  { %497 = vsyncpa [#allocation6 + $0x1], 1 }
  0x9d   :  { %498 = vsyncpa [#allocation4], 1 }
  0x9e   :  { %500 = vsyncpa [#allocation4 + $0x1], 1 }
  0x9f   :  { %501 = vsyncpa [#allocation9], 1 }
  0xa0   :  { %503 = vsyncpa [#allocation9 + $0x1], 1 }

</bundles_post_ra>
